<compile_context>
chip_gen: v7x
topology: tpu7x:2x2x1
jax: 0.10.0
libtpu: 0.0.40
codegen_flags: <defaults>
</compile_context>

<pallas_src>
import jax
import jax.numpy as jnp
from jax import lax
from jax.experimental import pallas as pl
from jax.experimental.pallas import tpu as pltpu


# Contract x dim 1 with W dim 1 (W is (F_out, F_in)), i.e. x @ W.T on the MXU.
_DOT_TRANS_B = (((1,), (1,)), ((), ()))


def _noisy_linear_kernel(x_ref, mu_w_ref, sig_w_ref, eps_in_ref, eps_out_ref,
                         mu_b_ref, sig_b_ref, o_ref):
    x = x_ref[...]                                   # (B, F_in)
    eps_out = eps_out_ref[...]                       # (1, tn)
    # mu path (MXU)
    y_mu = lax.dot_general(x, mu_w_ref[...], _DOT_TRANS_B,
                           preferred_element_type=jnp.float32)
    # sigma path: (x * eps_in) @ sigma_w.T, scaled per-output-column by eps_out
    x_noisy = x * eps_in_ref[...]                    # (1,F_in) row: sublane bcast
    y_sig = lax.dot_general(x_noisy, sig_w_ref[...], _DOT_TRANS_B,
                            preferred_element_type=jnp.float32)
    b_eff = sig_b_ref[...] * eps_out + mu_b_ref[...]  # (1, tn)
    o_ref[...] = (y_mu + y_sig * eps_out + b_eff).astype(o_ref.dtype)


def _mu_linear_kernel(x_ref, mu_w_ref, mu_b_ref, o_ref):
    y = lax.dot_general(x_ref[...], mu_w_ref[...], _DOT_TRANS_B,
                        preferred_element_type=jnp.float32)
    o_ref[...] = (y + mu_b_ref[...]).astype(o_ref.dtype)


def _pick_out_tile(f_out, f_in, preferred=512, weight_budget_bytes=8 * 1024 * 1024):
    """Lane-dense F_out tile: multiple of 128 dividing f_out, sized for VMEM."""
    if f_out % 128 != 0:
        return f_out                                  # full extent (legal block)
    tn = min(preferred, f_out)
    tn -= tn % 128
    # 2 weight inputs x 2 pipeline buffers x (tn * f_in * 4B) under the budget
    # (keeps double-buffering alive even on v7x's smaller VMEM).
    while tn > 128 and (4 * tn * f_in * 4) > weight_budget_bytes:
        tn -= 128
    while f_out % tn != 0:
        tn -= 128
    return max(tn, 128)


def noisy_layer_forward(x, params, eps_in, eps_out, training=True):
    """Pallas implementation of NoisyLayer.forward.

    x:       (B, F_in) float32
    params:  dict with mu_weight (F_out, F_in), sigma_weight (F_out, F_in),
             mu_bias (F_out,), sigma_bias (F_out,)
    eps_in:  (F_in,) factored noise (already sign*sqrt-transformed)
    eps_out: (F_out,)
    training=False reproduces the eval branch: pure mu linear, sigma never read.
    """
    B, F_in = x.shape
    F_out = params["mu_bias"].shape[0]

    x = x.astype(jnp.float32)
    mu_w = params["mu_weight"].astype(jnp.float32)          # (F_out, F_in), native
    mu_b = params["mu_bias"].reshape(1, F_out).astype(jnp.float32)

    tn = _pick_out_tile(F_out, F_in)
    grid = (F_out // tn,)

    x_spec = pl.BlockSpec((B, F_in), lambda j: (0, 0))
    w_spec = pl.BlockSpec((tn, F_in), lambda j: (j, 0))
    row_out_spec = pl.BlockSpec((1, tn), lambda j: (0, j))
    row_in_spec = pl.BlockSpec((1, F_in), lambda j: (0, 0))
    o_spec = pl.BlockSpec((B, tn), lambda j: (0, j))

    cparams = pltpu.CompilerParams(
        dimension_semantics=("parallel",),
        vmem_limit_bytes=32 * 1024 * 1024,
    )

    if not training:
        # Eval path: mu-only linear, sigma_weight never touched.
        return pl.pallas_call(
            _mu_linear_kernel,
            out_shape=jax.ShapeDtypeStruct((B, F_out), jnp.float32),
            grid=grid,
            in_specs=[x_spec, w_spec, row_out_spec],
            out_specs=o_spec,
            compiler_params=cparams,
        )(x, mu_w, mu_b)

    sig_w = params["sigma_weight"].astype(jnp.float32)       # (F_out, F_in), native
    sig_b = params["sigma_bias"].reshape(1, F_out).astype(jnp.float32)
    eps_in_row = eps_in.reshape(1, F_in).astype(jnp.float32)
    eps_out_row = eps_out.reshape(1, F_out).astype(jnp.float32)

    return pl.pallas_call(
        _noisy_linear_kernel,
        out_shape=jax.ShapeDtypeStruct((B, F_out), jnp.float32),
        grid=grid,
        in_specs=[x_spec, w_spec, w_spec, row_in_spec, row_out_spec,
                  row_out_spec, row_out_spec],
        out_specs=o_spec,
        compiler_params=cparams,
    )(x, mu_w, sig_w, eps_in_row, eps_out_row, mu_b, sig_b)


def init_noisy_layer(key, input_features, output_features, sigma=0.5):
    """Deterministic parameter init mirroring NoisyLayer.parameter_initialization."""
    bound = input_features ** (-0.5)
    k_mu_b, k_mu_w = jax.random.split(key)
    params = {
        "mu_bias": jax.random.uniform(k_mu_b, (output_features,),
                                      minval=-bound, maxval=bound,
                                      dtype=jnp.float32),
        "sigma_bias": jnp.full((output_features,), sigma * bound, jnp.float32),
        "mu_weight": jax.random.uniform(k_mu_w, (output_features, input_features),
                                        minval=-bound, maxval=bound,
                                        dtype=jnp.float32),
        "sigma_weight": jnp.full((output_features, input_features),
                                 sigma * bound, jnp.float32),
    }
    return params, bound


def sample_noise(key, input_features, output_features, bound):
    """NoisyLayer.get_noise_tensor: u ~ U(-bound, bound); sign(u)*sqrt(|u|)."""
    k_in, k_out = jax.random.split(key)

    def noise(k, n):
        u = jax.random.uniform(k, (n,), minval=-bound, maxval=bound,
                               dtype=jnp.float32)
        return jnp.sign(u) * jnp.sqrt(jnp.abs(u))

    return noise(k_in, input_features), noise(k_out, output_features)


if __name__ == "__main__":
    key = jax.random.PRNGKey(0)
    k_param, k_noise, k_x = jax.random.split(key, 3)

    B, F_in, F_out = 8, 32, 64

    params, bound = init_noisy_layer(k_param, F_in, F_out, sigma=0.5)
    eps_in, eps_out = sample_noise(k_noise, F_in, F_out, bound)
    x = jax.random.normal(k_x, (B, F_in), dtype=jnp.float32)

    # Training-mode forward (noisy weights), executed in the Pallas kernel.
    y = noisy_layer_forward(x, params, eps_in, eps_out, training=True)
    y = jax.block_until_ready(y)

    # Pure-JAX reference of the original (non-factored) math.
    w_eff = params["sigma_weight"] * jnp.outer(eps_out, eps_in) + params["mu_weight"]
    b_eff = params["sigma_bias"] * eps_out + params["mu_bias"]
    y_ref = x @ w_eff.T + b_eff
    assert jnp.allclose(y, y_ref, atol=1e-4, rtol=1e-5)

    # Eval-mode forward (mu-only linear), sigma path skipped entirely.
    y_eval = jax.block_until_ready(
        noisy_layer_forward(x, params, eps_in, eps_out, training=False))
    y_eval_ref = x @ params["mu_weight"].T + params["mu_bias"]
    assert jnp.allclose(y_eval, y_eval_ref, atol=1e-4, rtol=1e-5)

    print("KERNEL_OK")
</pallas_src>

<mosaic_0001>
module attributes {stable_mosaic.version = 11 : i64} {
  func.func @_noisy_linear_kernel(%arg0: i32, %arg1: memref<8x32xf32, #tpu.memory_space<vmem>>, %arg2: memref<64x32xf32, #tpu.memory_space<vmem>>, %arg3: memref<64x32xf32, #tpu.memory_space<vmem>>, %arg4: memref<1x32xf32, #tpu.memory_space<vmem>>, %arg5: memref<1x64xf32, #tpu.memory_space<vmem>>, %arg6: memref<1x64xf32, #tpu.memory_space<vmem>>, %arg7: memref<1x64xf32, #tpu.memory_space<vmem>>, %arg8: memref<8x64xf32, #tpu.memory_space<vmem>>) attributes {dimension_semantics = [#tpu.dimension_semantics<parallel>], iteration_bounds = array<i64: 1>, scalar_prefetch = 0 : i64, scratch_operands = 0 : i64, tpu.core_type = #tpu.core_type<tc>, window_params = [{pipeline_mode = #tpu.pipeline_mode<synchronous>, transform_indices = @transform_0, window_bounds = array<i64: 8, 32>}, {transform_indices = @transform_1, window_bounds = array<i64: 64, 32>}, {transform_indices = @transform_2, window_bounds = array<i64: 64, 32>}, {pipeline_mode = #tpu.pipeline_mode<synchronous>, transform_indices = @transform_3, window_bounds = array<i64: 1, 32>}, {transform_indices = @transform_4, window_bounds = array<i64: 1, 64>}, {transform_indices = @transform_5, window_bounds = array<i64: 1, 64>}, {transform_indices = @transform_6, window_bounds = array<i64: 1, 64>}, {transform_indices = @transform_7, window_bounds = array<i64: 8, 64>}]} {
    %c0 = arith.constant 0 : index
    %c0_0 = arith.constant 0 : index
    %0 = vector.load %arg1[%c0, %c0_0] : memref<8x32xf32, #tpu.memory_space<vmem>>, vector<8x32xf32>
    %c0_1 = arith.constant 0 : index
    %c0_2 = arith.constant 0 : index
    %1 = vector.load %arg5[%c0_1, %c0_2] : memref<1x64xf32, #tpu.memory_space<vmem>>, vector<1x64xf32>
    %c0_3 = arith.constant 0 : index
    %c0_4 = arith.constant 0 : index
    %2 = vector.load %arg2[%c0_3, %c0_4] : memref<64x32xf32, #tpu.memory_space<vmem>>, vector<64x32xf32>
    %cst = arith.constant dense<0.000000e+00> : vector<8x64xf32>
    %3 = tpu.matmul %0, %2, %cst {dimension_numbers = #tpu.dot_dimension_numbers<[1], [1], [0], [0], [0, 0, 1, 0], [], []>} : vector<8x32xf32>, vector<64x32xf32>, vector<8x64xf32> -> vector<8x64xf32>
    %c0_5 = arith.constant 0 : index
    %c0_6 = arith.constant 0 : index
    %4 = vector.load %arg4[%c0_5, %c0_6] : memref<1x32xf32, #tpu.memory_space<vmem>>, vector<1x32xf32>
    %5 = vector.broadcast %4 : vector<1x32xf32> to vector<8x32xf32>
    %6 = arith.mulf %0, %5 : vector<8x32xf32>
    %c0_7 = arith.constant 0 : index
    %c0_8 = arith.constant 0 : index
    %7 = vector.load %arg3[%c0_7, %c0_8] : memref<64x32xf32, #tpu.memory_space<vmem>>, vector<64x32xf32>
    %cst_9 = arith.constant dense<0.000000e+00> : vector<8x64xf32>
    %8 = tpu.matmul %6, %7, %cst_9 {dimension_numbers = #tpu.dot_dimension_numbers<[1], [1], [0], [0], [0, 0, 1, 0], [], []>} : vector<8x32xf32>, vector<64x32xf32>, vector<8x64xf32> -> vector<8x64xf32>
    %c0_10 = arith.constant 0 : index
    %c0_11 = arith.constant 0 : index
    %9 = vector.load %arg7[%c0_10, %c0_11] : memref<1x64xf32, #tpu.memory_space<vmem>>, vector<1x64xf32>
    %10 = arith.mulf %9, %1 : vector<1x64xf32>
    %c0_12 = arith.constant 0 : index
    %c0_13 = arith.constant 0 : index
    %11 = vector.load %arg6[%c0_12, %c0_13] : memref<1x64xf32, #tpu.memory_space<vmem>>, vector<1x64xf32>
    %12 = arith.addf %10, %11 : vector<1x64xf32>
    %13 = vector.broadcast %1 : vector<1x64xf32> to vector<8x64xf32>
    %14 = arith.mulf %8, %13 : vector<8x64xf32>
    %15 = arith.addf %3, %14 : vector<8x64xf32>
    %16 = vector.broadcast %12 : vector<1x64xf32> to vector<8x64xf32>
    %17 = arith.addf %15, %16 : vector<8x64xf32>
    %c0_14 = arith.constant 0 : index
    %c0_15 = arith.constant 0 : index
    %18 = vector.load %arg8[%c0_14, %c0_15] : memref<8x64xf32, #tpu.memory_space<vmem>>, vector<8x64xf32>
    tpu.vector_store %arg8[%c0_14, %c0_15], %17 {strides = array<i32>} : memref<8x64xf32, #tpu.memory_space<vmem>>, vector<8x64xf32>,
    return
  }
  func.func @transform_0(%arg0: i32) -> (i32, i32) {
    %c0_i32 = arith.constant 0 : i32
    %c0_i32_0 = arith.constant 0 : i32
    %c0_i32_1 = arith.constant 0 : i32
    return %c0_i32, %c0_i32_0 : i32, i32
  }
  func.func @transform_1(%arg0: i32) -> (i32, i32) {
    %c0_i32 = arith.constant 0 : i32
    %c0_i32_0 = arith.constant 0 : i32
    return %arg0, %c0_i32 : i32, i32
  }
  func.func @transform_2(%arg0: i32) -> (i32, i32) {
    %c0_i32 = arith.constant 0 : i32
    %c0_i32_0 = arith.constant 0 : i32
    return %arg0, %c0_i32 : i32, i32
  }
  func.func @transform_3(%arg0: i32) -> (i32, i32) {
    %c0_i32 = arith.constant 0 : i32
    %c0_i32_0 = arith.constant 0 : i32
    %c0_i32_1 = arith.constant 0 : i32
    return %c0_i32, %c0_i32_0 : i32, i32
  }
  func.func @transform_4(%arg0: i32) -> (i32, i32) {
    %c0_i32 = arith.constant 0 : i32
    %c0_i32_0 = arith.constant 0 : i32
    return %c0_i32, %arg0 : i32, i32
  }
  func.func @transform_5(%arg0: i32) -> (i32, i32) {
    %c0_i32 = arith.constant 0 : i32
    %c0_i32_0 = arith.constant 0 : i32
    return %c0_i32, %arg0 : i32, i32
  }
  func.func @transform_6(%arg0: i32) -> (i32, i32) {
    %c0_i32 = arith.constant 0 : i32
    %c0_i32_0 = arith.constant 0 : i32
    return %c0_i32, %arg0 : i32, i32
  }
  func.func @transform_7(%arg0: i32) -> (i32, i32) {
    %c0_i32 = arith.constant 0 : i32
    %c0_i32_0 = arith.constant 0 : i32
    return %c0_i32, %arg0 : i32, i32
  }
}

</mosaic_0001>

<bundles_post_ra>
// kernel: tpu_custom_call.1
= control target key start
LH: loop header
LB: loop body
LE: loop exit
PB: predicated region body
PF: predicated region fallthrough
CT: control target
= control target key end

     0   :  { %vm53_vm0 = vcmask 261120   ;;  %v417_v3 = vmov 0.0|0.0   ;;  %vm418_vm2 = vmmov 0   ;;  %v419_v8 = vmov 0.0   ;;  %s560_s0 = inlined_call_operand.vmem [shape: f32[8,32], index: 0, kind: input, shape index: {}]   ;;  %s561_s1 = inlined_call_operand.vmem [shape: f32[64,32], index: 1, kind: input, shape index: {}]   ;;  %s562_s2 = inlined_call_operand.vmem [shape: f32[64,32], index: 2, kind: input, shape index: {}]   ;;  %s563_s3 = inlined_call_operand.vmem [shape: f32[1,32], index: 3, kind: input, shape index: {}]   ;;  %s564_s4 = inlined_call_operand.vmem [shape: f32[1,64], index: 4, kind: input, shape index: {}]   ;;  %s565_s5 = inlined_call_operand.vmem [shape: f32[1,64], index: 5, kind: input, shape index: {}]   ;;  %s566_s6 = inlined_call_operand.vmem [shape: f32[1,64], index: 6, kind: input, shape index: {}]   ;;  %s567_s7 = inlined_call_operand.hbm [shape: f32[8,64], index: 7, kind: output, shape index: {}]  }
   0x1   :  { %v45_v0 = vld [vmem:[%s562_s2] sm:$0xff]  ;;  %v46_v1 = vld [vmem:[%s562_s2 + $0x8] sm:$0xff]  ;;  %357 = vmatprep.subr.bf16.mxu0 %v417_v3  ;;  %vm472_vm1 = vmpackc.low %vm53_vm0, %vm53_vm0  ;;  %373 = vmatprep.subr.bf16.mxu1 %v417_v3 }
   0x2   :  { %v29_v2 = vld [vmem:[%s561_s1] sm:$0xff]  ;;  %v358_v4 = vpack.c.bf16 %v46_v1, %v45_v0  ;;  %v30_v6 = vld [vmem:[%s561_s1 + $0x8] sm:$0xff]  ;;  %335 = vmatprep.mubr.msk.f32.mxu0 %vm418_vm2, %v419_v8  ;;  %354 = vmatprep.mubr.msk.f32.mxu1 %vm418_vm2, %v419_v8  ;;  %v47_v9 = vld [vmem:[%s562_s2 + $0x10] sm:$0xff] }
   0x3   :  { %v374_v7 = vpack.c.bf16 %v30_v6, %v29_v2  ;;  %v48_v10 = vld [vmem:[%s562_s2 + $0x18] sm:$0xff]  ;;  %v31_v11 = vld [vmem:[%s561_s1 + $0x10] sm:$0xff] }
   0x4   :  { %360 = vmatpush3.bf16.xpose.msk.msra.mxu0 %vm472_vm1, %v358_v4  ;;  %v32_v12 = vld [vmem:[%s561_s1 + $0x18] sm:$0xff] }
   0x5   :  { %376 = vmatpush3.bf16.xpose.msk.msra.mxu1 %vm472_vm1, %v374_v7  ;;  %361 = vmatprep.subr.bf16.mxu0 %v417_v3 }
   0x6   :  { %377 = vmatprep.subr.bf16.mxu1 %v417_v3 }
   0x7   :  { %12 = vsyncpa [#allocation3], 0  ;;  %v362_v13 = vpack.c.bf16 %v48_v10, %v47_v9  ;;  %v378_v14 = vpack.c.bf16 %v32_v12, %v31_v11  ;;  %v49_v15 = vld [vmem:[%s562_s2 + $0x20] sm:$0xff]  ;;  %v50_v16 = vld [vmem:[%s562_s2 + $0x28] sm:$0xff]  ;;  %v156_v30 = vlaneseq  ;;  %s420_s16 = smov [#allocation2]   ;;  %vm266_vm3 = vcmask 523264  }
   0x8   :  { %v33_v17 = vld [vmem:[%s561_s1 + $0x20] sm:$0xff]  ;;  %v34_v18 = vld [vmem:[%s561_s1 + $0x28] sm:$0xff]  ;;  %v366_v19 = vpack.c.bf16 %v50_v16, %v49_v15  ;;  %v51_v21 = vld [vmem:[%s562_s2 + $0x30] sm:$0xff] }
   0x9   :  { %v382_v20 = vpack.c.bf16 %v34_v18, %v33_v17  ;;  %v52_v22 = vld [vmem:[%s562_s2 + $0x38] sm:$0xff]  ;;  %v35_v23 = vld [vmem:[%s561_s1 + $0x30] sm:$0xff]  ;;  %v27_v27 = vld [vmem:[%s560_s0] sm:$0xff]  ;;  %v157_v31 = vshrl.u32 %v156_v30, 7 }
   0xa   :  { %v36_v24 = vld [vmem:[%s561_s1 + $0x38] sm:$0xff]  ;;  %v370_v25 = vpack.c.bf16 %v52_v22, %v51_v21  ;;  %v282_v28 = vld [vmem:[%s563_s3] ss:$0 sm:$0xff] }
   0xb   :  { %v386_v26 = vpack.c.bf16 %v36_v24, %v35_v23  ;;  %v44_v29 = vmul.f32 %v282_v28, %v27_v27  ;;  %v28_v32 = vld [vmem:[%s564_s4] sm:$0x1]  ;;  %v158_v35 = vsub.s32 0, %v157_v31  ;;  %s274_s4 = sshll.u32 %s420_s16, 4  ;;  %s275_s4 = int_to_ptr.vmem [resolvable:$true] %s274_s4 }
   0xc   :  { %364 = vmatpush3.bf16.xpose.msk.msra.mxu0 %vm472_vm1, %v362_v13  ;;  %v151_v33 = vld [vmem:[%s566_s6] sm:$0x1]  ;;  %s393_s6 = scalar_lea.vmem %s275_s4, 128  ;;  %p398_p1 = scmp.lt.s32.totalorder %s275_s4, %s275_s4 }
   0xd   :  { %380 = vmatpush3.bf16.xpose.msk.msra.mxu1 %vm472_vm1, %v378_v14  ;;  %365 = vmatprep.subr.bf16.mxu0 %v417_v3  ;;  %v152_v34 = vmul.f32 %v151_v33, %v28_v32  ;;  %v153_v36 = vld [vmem:[%s565_s5] sm:$0x1]  ;;  %v159_v37 = vrot.slane %v28_v32, %v158_v35  ;;  %p394_p0 = scmp.ne.s32.totalorder %s275_s4, %s393_s6  ;;  %p399_p2 = scmp.lt.s32.totalorder %s393_s6, %s393_s6 }
   0xe   :  { %381 = vmatprep.subr.bf16.mxu1 %v417_v3 }
   0xf   :  { %v154_v38 = vadd.f32 %v153_v36, %v152_v34  ;;  %p400_p3 = por %p399_p2, %p398_p1 }
  0x11   :  { %v263_v43 = vrot.slane %v154_v38, %v158_v35  ;;  %p401_p4 = pnand %p400_p3, %p394_p0 }
  0x14   :  { %368 = vmatpush3.bf16.xpose.msk.msra.mxu0 %vm472_vm1, %v366_v19 }
  0x15   :  { %384 = vmatpush3.bf16.xpose.msk.msra.mxu1 %vm472_vm1, %v382_v20  ;;  %369 = vmatprep.subr.bf16.mxu0 %v417_v3 }
  0x16   :  { %385 = vmatprep.subr.bf16.mxu1 %v417_v3 }
  0x1c   :  { %372 = vmatpush3.bf16.xpose.msk.msra.mxu0 %vm472_vm1, %v370_v25 }
  0x1d   :  { %388 = vmatpush3.bf16.xpose.msk.msra.mxu1 %vm472_vm1, %v386_v26 }
  0x23   :  { %336 = vmatmul.mubr.msk.f32.vlgmr.msra.gmra.mrb[0].mxu0 %vm53_vm0, %v44_v29 }
  0x24   :  { %355 = vmatmul.mubr.msk.f32.vlgmr.msra.gmra.mrb[0].mxu1 %vm53_vm0, %v27_v27 }
  0xf6   :  { %v147_v39 = vpop.f32.mrb[0].mxu0 }
  0xf7   :  { %v161_v40 = vmul.f32 %v159_v37, %v147_v39  ;;  %v337_v41 = vpop.f32.mrb[1].mxu0  ;;  %v255_v42 = vpop.f32.mrb[0].mxu1 }
  0xf8   :  { %v356_v44 = vpop.f32.mrb[1].mxu1 }
  0xf9   :  { %v256_v45 = vadd.f32 %v255_v42, %v161_v40 }
  0xfb   :  { %v265_v46 = vadd.f32 %v263_v43, %v256_v45 }
  0xfd   :  { %267 = vst.msk [vmem:[#allocation2] sm:$0xff] %vm266_vm3, %v265_v46 }
  0xfe   :  { %404 = shalt.err (!%p401_p4)
}
  0xff   :  { %s405_s18 = scalar_lea.hbm %s567_s7, 128 }
 0x100   :  { %p406_p5 = scmp.ne.s32.totalorder %s567_s7, %s405_s18  ;;  %p409_p6 = scmp.lt.u32.totalorder %s405_s18, %s567_s7 }
 0x102   :  { %p411_p7 = pnand %p409_p6, %p406_p5 }
 0x104   :  { %414 = shalt.err (!%p411_p7)
}
 0x105   :  { %277 = dma.vmem_to_hbm [thread:$0]  %s275_s4, 128, %s567_s7, [#allocation3]  }
 0x106   :  { %415 = dma.done.wait [#allocation3], 128  }
 0x107   :  { %416 = vsyncadd [#allocation3], 4294967168 }
 0x108   :  { %281 = vsyncpa [#allocation3], 1 }

</bundles_post_ra>
